<compile_context>
chip_gen: v5e
topology: v5e:2x2
jax: 0.10.0
libtpu: 0.0.40
codegen_flags: <defaults>
</compile_context>

<pallas_src>
import functools
import math

import jax
import jax.numpy as jnp
from jax.experimental import pallas as pl
from jax.experimental.pallas import tpu as pltpu


# Salts for the fallback counter-hash streams (unused on real TPUs).
_GOLD = 0x9E3779B9
_SALT_UNIFORM = 0x2545F491
_SALT_U1 = 0x5851F42D
_SALT_U2 = 0xA511E9B3
_TWO_PI = 2.0 * math.pi


def _round_up(x, m):
    return ((x + m - 1) // m) * m


def _avalanche_u32(x):
    """'lowbias32' integer finalizer: uint32 -> well-mixed uint32 (fallback RNG)."""
    x = x ^ (x >> 16)
    x = x * jnp.uint32(0x7FEB352D)
    x = x ^ (x >> 15)
    x = x * jnp.uint32(0x846CA68B)
    x = x ^ (x >> 16)
    return x


def _bits_to_unit(bits_u32):
    """uint32 bits -> float32 uniform in [1, 2) via mantissa fill."""
    mant = (bits_u32 >> 9) | jnp.uint32(0x3F800000)
    return jax.lax.bitcast_convert_type(mant, jnp.float32)


def _classical_noise_kernel(seed_ref, out_ref, *, generator_type, use_hw_prng):
    tile_rows, cols = out_ref.shape

    if use_hw_prng:
        # One deterministic hardware-PRNG stream per grid tile.
        pltpu.prng_seed(seed_ref[0], pl.program_id(0))
    else:
        # Fallback (interpret / non-TPU): counter-based hash. Scalar mix is
        # hoisted once; row-scale multiply uses the tile's column count.
        seed_mix = seed_ref[0].astype(jnp.uint32) * jnp.uint32(_GOLD)
        base_row = (pl.program_id(0) * tile_rows).astype(jnp.uint32)

    def draw_bits(shape, salt):
        if use_hw_prng:
            bits = pltpu.prng_random_bits(shape)
            return bits.astype(jnp.uint32)
        r = jax.lax.broadcasted_iota(jnp.int32, shape, 0).astype(jnp.uint32)
        c = jax.lax.broadcasted_iota(jnp.int32, shape, 1).astype(jnp.uint32)
        idx = (base_row + r) * jnp.uint32(cols) + c
        return _avalanche_u32(idx + seed_mix + jnp.uint32(salt))

    if generator_type == "classical_uniform":
        # rand()*2 - 1 fused into the bit trick: mantissa | exp([2,4)) - 3.0 in [-1,1)
        bits = draw_bits((tile_rows, cols), _SALT_UNIFORM)
        mant = (bits >> 9) | jnp.uint32(0x40000000)           # float32 in [2, 4)
        out_ref[...] = (jax.lax.bitcast_convert_type(mant, jnp.float32)
                        - jnp.float32(3.0))
    elif generator_type == "classical_normal":
        def normal_pair(shape):
            # Box-Muller keeping BOTH outputs; sin derived from cos via sqrt (EUP)
            # instead of a second range-reduction polynomial (VALU).
            b1 = draw_bits(shape, _SALT_U1)
            b2 = draw_bits(shape, _SALT_U2)
            u1 = jnp.float32(2.0) - _bits_to_unit(b1)         # (0, 1] -> log-safe
            u2 = _bits_to_unit(b2) - jnp.float32(1.0)         # [0, 1)
            r = jnp.sqrt(jnp.float32(-2.0) * jnp.log(u1))
            c = jnp.cos(jnp.float32(_TWO_PI) * u2)
            sgn = jnp.where(u2 < jnp.float32(0.5), jnp.float32(1.0), jnp.float32(-1.0))
            s = sgn * jnp.sqrt(jnp.maximum(jnp.float32(1.0) - c * c, jnp.float32(0.0)))
            return r * c, r * s

        if tile_rows % 2 == 0:
            # Row (sublane) split keeps every store full lane-width.
            half = tile_rows // 2
            z_cos, z_sin = normal_pair((half, cols))
            out_ref[:half, :] = z_cos
            out_ref[half:, :] = z_sin
        else:
            # Tiny odd-row tile: single-output Box-Muller for the whole tile.
            z_cos, _ = normal_pair((tile_rows, cols))
            out_ref[...] = z_cos
    else:
        raise ValueError(f"Unknown generator type: {generator_type}")


def classical_noise(batch_size, z_dim, generator_type, seed,
                    *, max_tile_rows=1024, interpret=False):
    """Pallas equivalent of ClassicalNoise(z_dim, generator_type).forward(batch_size)."""
    if generator_type not in ("classical_normal", "classical_uniform"):
        raise ValueError(f"Unknown generator type: {generator_type}")

    total = batch_size * z_dim
    use_hw_prng = (not interpret) and (jax.devices()[0].platform == "tpu")

    # ---- Output layout: never pay a post-kernel HBM copy. ----
    if z_dim % 128 == 0:
        rows, cols = batch_size, z_dim       # direct, lane-dense
        needs_reshape = False
    else:
        cols = next((c for c in (1024, 512, 256) if total % c == 0), 0)
        if cols:
            rows = total // cols             # exact lane-dense slab; reshape is a bitcast
            needs_reshape = True
        else:
            rows, cols = batch_size, z_dim   # direct; partial-lane stores but no copy
            needs_reshape = False

    # ---- Row tiling: >=2 tiles when possible (v7x megacore), VMEM-safe on v5e. ----
    if rows <= 8:
        tile_rows = rows                     # single tile == full array (no (8,128) rule)
        num_tiles = 1
    else:
        tile_rows = min(max_tile_rows, _round_up(pl.cdiv(rows, 2), 8))
        num_tiles = pl.cdiv(rows, tile_rows)  # boundary block masked by Pallas if partial

    seed_arr = jnp.asarray([seed], dtype=jnp.int32)
    kernel = functools.partial(_classical_noise_kernel,
                               generator_type=generator_type,
                               use_hw_prng=use_hw_prng)

    is_normal = generator_type == "classical_normal"
    cost = pl.CostEstimate(
        flops=(12 if is_normal else 4) * total,
        transcendentals=(2 * total) if is_normal else 0,
        bytes_accessed=4 * rows * cols + 4,
    )

    out = pl.pallas_call(
        kernel,
        out_shape=jax.ShapeDtypeStruct((rows, cols), jnp.float32),
        grid=(num_tiles,),
        in_specs=[pl.BlockSpec(memory_space=pltpu.MemorySpace.SMEM)],
        out_specs=pl.BlockSpec((tile_rows, cols), lambda i: (i, 0)),
        compiler_params=pltpu.CompilerParams(
            dimension_semantics=("parallel",)),   # megacore sharding on v7x
        cost_estimate=cost,
        interpret=interpret,
    )(seed_arr)

    if needs_reshape:
        out = out.reshape(batch_size, z_dim)      # same element count -> free bitcast
    return out


if __name__ == "__main__":
    # Small shapes consistent with the module: batch=2, z_dim=32.
    batch_size = 2
    z_dim = 32

    key = jax.random.PRNGKey(0)
    seed = int(jax.random.randint(key, (), 0, 2**31 - 1))

    out_normal = classical_noise(batch_size, z_dim, "classical_normal", seed)
    out_uniform = classical_noise(batch_size, z_dim, "classical_uniform", seed)
    jax.block_until_ready((out_normal, out_uniform))

    assert out_normal.shape == (batch_size, z_dim) and out_normal.dtype == jnp.float32
    assert out_uniform.shape == (batch_size, z_dim) and out_uniform.dtype == jnp.float32
    # uniform samples must lie in [-1, 1)
    assert bool(jnp.all(out_uniform >= -1.0)) and bool(jnp.all(out_uniform < 1.0))
    # normal samples must be finite and roughly standard-normal (very loose bounds)
    assert bool(jnp.all(jnp.isfinite(out_normal)))
    assert abs(float(jnp.mean(out_normal))) < 0.8
    assert 0.4 < float(jnp.std(out_normal)) < 1.6
    # determinism given the same seed
    out_normal2 = classical_noise(batch_size, z_dim, "classical_normal", seed)
    assert bool(jnp.all(out_normal == out_normal2))

    # Lane-dense direct path (z_dim % 128 == 0) with >= 2 grid tiles (megacore).
    big_n = classical_noise(16, 128, "classical_normal", seed)
    big_u = classical_noise(16, 128, "classical_uniform", seed)
    jax.block_until_ready((big_n, big_u))
    assert big_n.shape == (16, 128) and bool(jnp.all(jnp.isfinite(big_n)))
    assert 0.8 < float(jnp.std(big_n)) < 1.2
    assert bool(jnp.all(big_u >= -1.0)) and bool(jnp.all(big_u < 1.0))

    # Exact lane-dense slab path (total % 256 == 0, z_dim % 128 != 0): no padding copy.
    slab_u = classical_noise(8, 64, "classical_uniform", seed)
    jax.block_until_ready(slab_u)
    assert slab_u.shape == (8, 64)
    assert bool(jnp.all(slab_u >= -1.0)) and bool(jnp.all(slab_u < 1.0))

    print("KERNEL_OK")
</pallas_src>

<mosaic_0001>
module attributes {stable_mosaic.version = 11 : i64} {
  func.func @_classical_noise_kernel(%arg0: i32, %arg1: memref<1xi32, #tpu.memory_space<smem>>, %arg2: memref<2x32xf32, #tpu.memory_space<vmem>>) attributes {dimension_semantics = [#tpu.dimension_semantics<parallel>], iteration_bounds = array<i64: 1>, scalar_prefetch = 0 : i64, scratch_operands = 0 : i64, tpu.core_type = #tpu.core_type<tc>, window_params = [{transform_indices = @transform_0, window_bounds = array<i64: 1>}, {transform_indices = @transform_1, window_bounds = array<i64: 2, 32>}]} {
    %c0 = arith.constant 0 : index
    %0 = memref.load %arg1[%c0] : memref<1xi32, #tpu.memory_space<smem>>
    %c-1640531527_i32 = arith.constant -1640531527 : i32
    %1 = arith.muli %0, %c-1640531527_i32 : i32
    %c2_i32 = arith.constant 2 : i32
    %2 = arith.muli %arg0, %c2_i32 : i32
    %3 = tpu.iota {dimensions = array<i32: 0>} : vector<1x32xi32>
    %4 = tpu.iota {dimensions = array<i32: 1>} : vector<1x32xi32>
    %5 = vector.broadcast %2 : i32 to vector<1x32xi32>
    %6 = arith.addi %5, %3 : vector<1x32xi32>
    %c32_i32 = arith.constant 32 : i32
    %7 = vector.broadcast %c32_i32 : i32 to vector<1x32xi32>
    %8 = arith.muli %6, %7 : vector<1x32xi32>
    %9 = arith.addi %8, %4 : vector<1x32xi32>
    %10 = vector.broadcast %1 : i32 to vector<1x32xi32>
    %11 = arith.addi %9, %10 : vector<1x32xi32>
    %c1481765933_i32 = arith.constant 1481765933 : i32
    %12 = vector.broadcast %c1481765933_i32 : i32 to vector<1x32xi32>
    %13 = arith.addi %11, %12 : vector<1x32xi32>
    %c16_i32 = arith.constant 16 : i32
    %14 = vector.broadcast %c16_i32 : i32 to vector<1x32xi32>
    %15 = arith.shrui %13, %14 : vector<1x32xi32>
    %16 = arith.xori %13, %15 : vector<1x32xi32>
    %c2146121005_i32 = arith.constant 2146121005 : i32
    %17 = vector.broadcast %c2146121005_i32 : i32 to vector<1x32xi32>
    %18 = arith.muli %16, %17 : vector<1x32xi32>
    %c15_i32 = arith.constant 15 : i32
    %19 = vector.broadcast %c15_i32 : i32 to vector<1x32xi32>
    %20 = arith.shrui %18, %19 : vector<1x32xi32>
    %21 = arith.xori %18, %20 : vector<1x32xi32>
    %c-2073254261_i32 = arith.constant -2073254261 : i32
    %22 = vector.broadcast %c-2073254261_i32 : i32 to vector<1x32xi32>
    %23 = arith.muli %21, %22 : vector<1x32xi32>
    %c16_i32_0 = arith.constant 16 : i32
    %24 = vector.broadcast %c16_i32_0 : i32 to vector<1x32xi32>
    %25 = arith.shrui %23, %24 : vector<1x32xi32>
    %26 = arith.xori %23, %25 : vector<1x32xi32>
    %27 = tpu.iota {dimensions = array<i32: 0>} : vector<1x32xi32>
    %28 = tpu.iota {dimensions = array<i32: 1>} : vector<1x32xi32>
    %29 = vector.broadcast %2 : i32 to vector<1x32xi32>
    %30 = arith.addi %29, %27 : vector<1x32xi32>
    %c32_i32_1 = arith.constant 32 : i32
    %31 = vector.broadcast %c32_i32_1 : i32 to vector<1x32xi32>
    %32 = arith.muli %30, %31 : vector<1x32xi32>
    %33 = arith.addi %32, %28 : vector<1x32xi32>
    %34 = vector.broadcast %1 : i32 to vector<1x32xi32>
    %35 = arith.addi %33, %34 : vector<1x32xi32>
    %c-1525552717_i32 = arith.constant -1525552717 : i32
    %36 = vector.broadcast %c-1525552717_i32 : i32 to vector<1x32xi32>
    %37 = arith.addi %35, %36 : vector<1x32xi32>
    %c16_i32_2 = arith.constant 16 : i32
    %38 = vector.broadcast %c16_i32_2 : i32 to vector<1x32xi32>
    %39 = arith.shrui %37, %38 : vector<1x32xi32>
    %40 = arith.xori %37, %39 : vector<1x32xi32>
    %c2146121005_i32_3 = arith.constant 2146121005 : i32
    %41 = vector.broadcast %c2146121005_i32_3 : i32 to vector<1x32xi32>
    %42 = arith.muli %40, %41 : vector<1x32xi32>
    %c15_i32_4 = arith.constant 15 : i32
    %43 = vector.broadcast %c15_i32_4 : i32 to vector<1x32xi32>
    %44 = arith.shrui %42, %43 : vector<1x32xi32>
    %45 = arith.xori %42, %44 : vector<1x32xi32>
    %c-2073254261_i32_5 = arith.constant -2073254261 : i32
    %46 = vector.broadcast %c-2073254261_i32_5 : i32 to vector<1x32xi32>
    %47 = arith.muli %45, %46 : vector<1x32xi32>
    %c16_i32_6 = arith.constant 16 : i32
    %48 = vector.broadcast %c16_i32_6 : i32 to vector<1x32xi32>
    %49 = arith.shrui %47, %48 : vector<1x32xi32>
    %50 = arith.xori %47, %49 : vector<1x32xi32>
    %c9_i32 = arith.constant 9 : i32
    %51 = vector.broadcast %c9_i32 : i32 to vector<1x32xi32>
    %52 = arith.shrui %26, %51 : vector<1x32xi32>
    %c1065353216_i32 = arith.constant 1065353216 : i32
    %53 = vector.broadcast %c1065353216_i32 : i32 to vector<1x32xi32>
    %54 = arith.ori %52, %53 : vector<1x32xi32>
    %55 = tpu.bitcast %54 : vector<1x32xi32> -> vector<1x32xf32>
    %cst = arith.constant 2.000000e+00 : f32
    %56 = vector.broadcast %cst : f32 to vector<1x32xf32>
    %57 = arith.subf %56, %55 : vector<1x32xf32>
    %c9_i32_7 = arith.constant 9 : i32
    %58 = vector.broadcast %c9_i32_7 : i32 to vector<1x32xi32>
    %59 = arith.shrui %50, %58 : vector<1x32xi32>
    %c1065353216_i32_8 = arith.constant 1065353216 : i32
    %60 = vector.broadcast %c1065353216_i32_8 : i32 to vector<1x32xi32>
    %61 = arith.ori %59, %60 : vector<1x32xi32>
    %62 = tpu.bitcast %61 : vector<1x32xi32> -> vector<1x32xf32>
    %cst_9 = arith.constant 1.000000e+00 : f32
    %63 = vector.broadcast %cst_9 : f32 to vector<1x32xf32>
    %64 = arith.subf %62, %63 : vector<1x32xf32>
    %65 = math.log %57 : vector<1x32xf32>
    %cst_10 = arith.constant -2.000000e+00 : f32
    %66 = vector.broadcast %cst_10 : f32 to vector<1x32xf32>
    %67 = arith.mulf %66, %65 : vector<1x32xf32>
    %68 = math.sqrt %67 : vector<1x32xf32>
    %cst_11 = arith.constant 6.28318548 : f32
    %69 = vector.broadcast %cst_11 : f32 to vector<1x32xf32>
    %70 = arith.mulf %69, %64 : vector<1x32xf32>
    %71 = math.cos %70 : vector<1x32xf32>
    %cst_12 = arith.constant 5.000000e-01 : f32
    %72 = vector.broadcast %cst_12 : f32 to vector<1x32xf32>
    %73 = arith.cmpf olt, %64, %72 : vector<1x32xf32>
    %cst_13 = arith.constant 1.000000e+00 : f32
    %cst_14 = arith.constant -1.000000e+00 : f32
    %74 = vector.broadcast %cst_13 : f32 to vector<1x32xf32>
    %75 = vector.broadcast %cst_14 : f32 to vector<1x32xf32>
    %76 = arith.select %73, %74, %75 : vector<1x32xi1>, vector<1x32xf32>
    %77 = arith.mulf %71, %71 : vector<1x32xf32>
    %cst_15 = arith.constant 1.000000e+00 : f32
    %78 = vector.broadcast %cst_15 : f32 to vector<1x32xf32>
    %79 = arith.subf %78, %77 : vector<1x32xf32>
    %cst_16 = arith.constant 0.000000e+00 : f32
    %80 = vector.broadcast %cst_16 : f32 to vector<1x32xf32>
    %81 = arith.maximumf %79, %80 : vector<1x32xf32>
    %82 = math.sqrt %81 : vector<1x32xf32>
    %83 = arith.mulf %76, %82 : vector<1x32xf32>
    %84 = arith.mulf %68, %71 : vector<1x32xf32>
    %85 = arith.mulf %68, %83 : vector<1x32xf32>
    %c0_17 = arith.constant 0 : index
    %c0_18 = arith.constant 0 : index
    %86 = vector.load %arg2[%c0_17, %c0_18] : memref<2x32xf32, #tpu.memory_space<vmem>>, vector<1x32xf32>
    tpu.vector_store %arg2[%c0_17, %c0_18], %84 {strides = array<i32>} : memref<2x32xf32, #tpu.memory_space<vmem>>, vector<1x32xf32>,
    %c1 = arith.constant 1 : index
    %c0_19 = arith.constant 0 : index
    %87 = vector.load %arg2[%c1, %c0_19] : memref<2x32xf32, #tpu.memory_space<vmem>>, vector<1x32xf32>
    tpu.vector_store %arg2[%c1, %c0_19], %85 {strides = array<i32>} : memref<2x32xf32, #tpu.memory_space<vmem>>, vector<1x32xf32>,
    return
  }
  func.func @transform_0(%arg0: i32) -> i32 {
    %c0_i32 = arith.constant 0 : i32
    %c0_i32_0 = arith.constant 0 : i32
    return %c0_i32 : i32
  }
  func.func @transform_1(%arg0: i32) -> (i32, i32) {
    %c0_i32 = arith.constant 0 : i32
    %c0_i32_0 = arith.constant 0 : i32
    return %arg0, %c0_i32 : i32, i32
  }
}

</mosaic_0001>

<bundles_post_ra>
// kernel: tpu_custom_call.1
= control target key start
LH: loop header
LB: loop body
LE: loop exit
PB: predicated region body
PF: predicated region fallthrough
CT: control target
= control target key end

     0   :  { %7 = vsyncpa [#allocation4], 0  ;;  %v13_v0 = vlaneseq  ;;  %v303_v37 = vmov 683565275   ;;  %v304_v39 = vmov 2475754826   ;;  %s388_s0 = inlined_call_operand.<no memory space> [shape: s32[1], index: 0, kind: input, shape index: {}]   ;;  %s389_s1 = inlined_call_operand.hbm [shape: f32[2,32], index: 1, kind: output, shape index: {}]  }
   0x1   :  { %s11_s8 = smul.u32 2654435769, %s388_s0  ;;  %v305_v41 = vmov 2131351028   ;;  %v306_v43 = vmov 2102212464  }
   0x2   :  { %v14_v1 = vshrl.u32 %v13_v0, 7  ;;  %v16_v2 = vand.u32 127, %v13_v0  ;;  %v307_v45 = vmov 920167782   ;;  %v308_v52 = vmov 1326507024  }
   0x3   :  { %v21_v4 = vstv %s11_s8  ;;  %s311_s0 = smov [#allocation3]   ;;  %s249_s12 = sshll.u32 %s389_s1, 4  ;;  %s250_s12 = int_to_ptr.hbm [resolvable:$true] %s249_s12 }
   0x4   :  { %v19_v3 = vmul.u32 32, %v14_v1  ;;  %s247_s9 = sshll.u32 %s311_s0, 4  ;;  %s248_s9 = int_to_ptr.vmem [resolvable:$true] %s247_s9 }
   0x6   :  { %v20_v5 = vadd.s32 %v19_v3, %v16_v2 }
   0x8   :  { %v22_v6 = vadd.s32 %v21_v4, %v20_v5 }
   0xa   :  { %v32_v7 = vadd.s32 2769414579, %v22_v6  ;;  %v23_v16 = vadd.s32 1481765933, %v22_v6 }
   0xc   :  { %v33_v8 = vshrl.u32 %v32_v7, 16  ;;  %v24_v19 = vshrl.u32 %v23_v16, 16 }
   0xe   :  { %v34_v9 = vxor.u32 %v33_v8, %v32_v7  ;;  %v25_v22 = vxor.u32 %v24_v19, %v23_v16 }
  0x10   :  { %v35_v10 = vmul.u32 2146121005, %v34_v9  ;;  %v26_v25 = vmul.u32 2146121005, %v25_v22 }
  0x12   :  { %v36_v11 = vshrl.u32 %v35_v10, 15  ;;  %v27_v29 = vshrl.u32 %v26_v25, 15 }
  0x14   :  { %v37_v12 = vxor.u32 %v36_v11, %v35_v10  ;;  %v28_v32 = vxor.u32 %v27_v29, %v26_v25 }
  0x16   :  { %v38_v13 = vmul.u32 2221713035, %v37_v12  ;;  %v29_v47 = vmul.u32 2221713035, %v28_v32  ;;  %v309_v32 = vmov 0  }
  0x18   :  { %v39_v14 = vshrl.u32 %v38_v13, 16  ;;  %v30_v62 = vshrl.u32 %v29_v47, 16 }
  0x1a   :  { %v40_v15 = vxor.u32 %v39_v14, %v38_v13  ;;  %v31_v11 = vxor.u32 %v30_v62, %v29_v47 }
  0x1c   :  { %v45_v17 = vshrl.u32 %v40_v15, 9 }
  0x1e   :  { %v46_v18 = vor.u32 1065353216, %v45_v17 }
  0x20   :  { %v325_v20 = vadd.f32 -1.0, %v46_v18 }
  0x22   :  { %v328_v21 = vmul.f32 6.2831855, %v325_v20 }
  0x24   :  { %v68_v23 = vand.u32 2139095040, %v328_v21  ;;  %v65_v26 = vand.u32 2147483647, %v328_v21  ;;  %vm67_vm12 = vcmp.lt.s32.totalorder %v328_v21, 0 }
  0x26   :  { %v69_v24 = vshrl.u32 %v68_v23, 23  ;;  %v72_v30 = vand.u32 8388607, %v65_v26  ;;  %vm372_vm13 = vcmp.le.f32.partialorder %v65_v26, 0.7853982 }
  0x28   :  { %v259_v27 = vadd.s32 4294967169, %v69_v24  ;;  %v73_v34 = vor.u32 8388608, %v72_v30  ;;  %v41_v24 = vshrl.u32 %v31_v11, 9 }
  0x2a   :  { %v75_v28 = vadd.s32 1, %v259_v27  ;;  %v337_v54 = vshll.u32 %v73_v34, 8 }
  0x2c   :  { %vm76_vm0 = vcmp.gt.s32.totalorder %v75_v28, 0  ;;  %v114_v3 = vand.u32 65535, %v337_v54  ;;  %v115_v4 = vshrl.u32 %v337_v54, 16 }
  0x2d   :  { %v77_v31 = vsel %vm76_vm0, %v75_v28, 0 }
  0x2e   :  { %v79_v33 = vand.u32 31, %v77_v31  ;;  %v334_v35 = vshrl.u32 %v77_v31, 5 }
  0x30   :  { %v80_v36 = vsub.s32 32, %v79_v33  ;;  %v82_v38 = vshll.u32 %v303_v37, %v79_v33  ;;  %v85_v40 = vshll.u32 %v304_v39, %v79_v33  ;;  %v88_v42 = vshll.u32 %v305_v41, %v79_v33 }
  0x31   :  { %v91_v44 = vshll.u32 %v306_v43, %v79_v33  ;;  %v94_v46 = vshll.u32 %v307_v45, %v79_v33  ;;  %vm97_vm1 = vcmp.lt.s32.totalorder %v334_v35, 1  ;;  %vm100_vm2 = vcmp.lt.s32.totalorder %v334_v35, 4 }
  0x32   :  { %v83_v48 = vshrl.u32 %v304_v39, %v80_v36  ;;  %v86_v49 = vshrl.u32 %v305_v41, %v80_v36  ;;  %v89_v50 = vshrl.u32 %v306_v43, %v80_v36  ;;  %v92_v51 = vshrl.u32 %v307_v45, %v80_v36 }
  0x33   :  { %v95_v53 = vshrl.u32 %v308_v52, %v80_v36  ;;  %vm99_vm3 = vcmp.lt.s32.totalorder %v334_v35, 3  ;;  %vm98_vm4 = vcmp.lt.s32.totalorder %v334_v35, 2  ;;  %v81_v12 = vshrl.u32 %v303_v37, %v80_v36 }
  0x34   :  { %v84_v55 = vor.u32 %v83_v48, %v82_v38  ;;  %v87_v56 = vor.u32 %v86_v49, %v85_v40  ;;  %v90_v57 = vor.u32 %v89_v50, %v88_v42  ;;  %v93_v58 = vor.u32 %v92_v51, %v91_v44 }
  0x35   :  { %v96_v59 = vor.u32 %v95_v53, %v94_v46  ;;  %v42_v48 = vor.u32 1065353216, %v41_v24 }
  0x36   :  { %v105_v60 = vsel %vm97_vm1, %v84_v55, %v87_v56  ;;  %v109_v61 = vsel %vm97_vm1, %v87_v56, %v90_v57  ;;  %v106_v63 = vsel %vm100_vm2, %v93_v58, 920167782  ;;  %v101_v28 = vsel %vm97_vm1, %v81_v12, %v84_v55 }
  0x37   :  { %v110_v0 = vsel %vm100_vm2, %v96_v59, 1326507024  ;;  %v107_v1 = vsel %vm99_vm3, %v90_v57, %v106_v63  ;;  %v102_v31 = vsel %vm100_vm2, %v90_v57, 2102212464  ;;  %v44_v57 = vsub.f32 2.0, %v42_v48 }
  0x38   :  { %v111_v2 = vsel %vm99_vm3, %v93_v58, %v110_v0  ;;  %v108_v5 = vsel %vm98_vm4, %v105_v60, %v107_v1  ;;  %v103_v42 = vsel %vm99_vm3, %v87_v56, %v102_v31  ;;  %vm208_vm3 = vweird.f32 %v328_v21 }
  0x39   :  { %v112_v6 = vsel %vm98_vm4, %v109_v61, %v111_v2  ;;  %v138_v9 = vand.u32 65535, %v108_v5  ;;  %v139_v10 = vshrl.u32 %v108_v5, 16  ;;  %v104_v51 = vsel %vm98_vm4, %v101_v28, %v103_v42 }
  0x3a   :  { %v116_v7 = vand.u32 65535, %v112_v6  ;;  %v117_v8 = vshrl.u32 %v112_v6, 16  ;;  %v158_v58 = vmul.u32 %v337_v54, %v104_v51  ;;  %271 = vlog2.f32 %v44_v57 }
  0x3b   :  { %v140_v16 = vmul.u32 %v138_v9, %v114_v3  ;;  %v141_v17 = vmul.u32 %v139_v10, %v114_v3  ;;  %v142_v18 = vmul.u32 %v138_v9, %v115_v4  ;;  %v143_v25 = vmul.u32 %v139_v10, %v115_v4 }
  0x3c   :  { %v118_v13 = vmul.u32 %v116_v7, %v114_v3  ;;  %v119_v14 = vmul.u32 %v117_v8, %v114_v3  ;;  %v120_v15 = vmul.u32 %v116_v7, %v115_v4  ;;  %v121_v19 = vmul.u32 %v117_v8, %v115_v4 }
  0x3d   :  { %v144_v27 = vshll.u32 %v141_v17, 16  ;;  %v146_v30 = vshll.u32 %v142_v18, 16  ;;  %v145_v40 = vshrl.u32 %v141_v17, 16  ;;  %v147_v46 = vshrl.u32 %v142_v18, 16 }
  0x3e   :  { %v122_v22 = vshll.u32 %v119_v14, 16  ;;  %v124_v23 = vshll.u32 %v120_v15, 16  ;;  %v123_v36 = vshrl.u32 %v119_v14, 16  ;;  %v125_v43 = vshrl.u32 %v120_v15, 16 }
  0x3f   :  { %vm148_vm6 = vc.u32 %v140_v16, %v144_v27  ;;  %v150_v34 = vadd.s32 %v144_v27, %v140_v16  ;;  %vm239_vm4 = vcmask 253952  }
  0x40   :  { %vm126_vm5 = vc.u32 %v118_v13, %v122_v22  ;;  %v128_v29 = vadd.s32 %v122_v22, %v118_v13  ;;  %v149_v38 = vsel %vm148_vm6, 1, %v309_v32  ;;  %v272_v63 = vpop.eup %271 }
  0x41   :  { %v127_v33 = vsel %vm126_vm5, 1, %v309_v32  ;;  %v151_v41 = vadd.s32 %v149_v38, %v143_v25  ;;  %vm152_vm8 = vc.u32 %v150_v34, %v146_v30  ;;  %v154_v50 = vadd.s32 %v150_v34, %v146_v30 }
  0x42   :  { %v129_v37 = vadd.s32 %v127_v33, %v121_v19  ;;  %vm130_vm7 = vc.u32 %v128_v29, %v124_v23  ;;  %v153_v45 = vsel %vm152_vm8, 1, %v309_v32  ;;  %v50_v2 = vmul.f32 0.6931472, %v272_v63 }
  0x43   :  { %v131_v39 = vsel %vm130_vm7, 1, %v309_v32  ;;  %v155_v47 = vadd.s32 %v153_v45, %v151_v41  ;;  %vm219_vm5 = vcmp.lt.f32.partialorder %v325_v20, 0.5 }
  0x44   :  { %v133_v44 = vadd.s32 %v131_v39, %v129_v37  ;;  %v51_v4 = vmul.f32 -2.0, %v50_v2 }
  0x45   :  { %v156_v52 = vadd.s32 %v155_v47, %v145_v40 }
  0x46   :  { %v134_v49 = vadd.s32 %v133_v44, %v123_v36  ;;  %273 = vrsqrt.f32 %v51_v4  ;;  %vm59_vm14 = vcmp.eq.f32.partialorder %v51_v4, inf  ;;  %vm61_vm0 = vcmp.eq.f32.partialorder %v51_v4, 0.0 }
  0x47   :  { %v157_v55 = vadd.s32 %v156_v52, %v147_v46 }
  0x48   :  { %v135_v53 = vadd.s32 %v134_v49, %v125_v43 }
  0x49   :  { %v161_v59 = vadd.s32 1, %v157_v55 }
  0x4a   :  { %vm160_vm9 = vc.u32 %v135_v53, %v154_v50  ;;  %v159_v7 = vadd.s32 %v154_v50, %v135_v53  ;;  %v62_v50 = vand.u32 2147483648, %v51_v4 }
  0x4b   :  { %v162_v56 = vsel %vm160_vm9, %v161_v59, %v157_v55 }
  0x4c   :  { %v163_v60 = vadd.s32 %v162_v56, %v158_v58  ;;  %v274_v13 = vpop.eup %273 }
  0x4d   :  { %v53_v18 = vmul.f32 %v274_v13, %v51_v4 }
  0x4e   :  { %v164_v61 = vadd.s32 536870912, %v163_v60 }
  0x4f   :  { %v54_v23 = vmul.f32 %v274_v13, %v53_v18 }
  0x50   :  { %v165_v62 = vshrl.u32 %v164_v61, 30 }
  0x51   :  { %v55_v28 = vmul.f32 0.5, %v54_v23 }
  0x52   :  { %v166_v0 = vshll.u32 %v165_v62, 30  ;;  %v189_v29 = vsub.s32 4, %v165_v62 }
  0x53   :  { %v56_v34 = vsub.f32 1.5, %v55_v28 }
  0x54   :  { %v167_v1 = vsub.s32 %v163_v60, %v166_v0  ;;  %v190_v36 = vsel %vm67_vm12, %v189_v29, %v165_v62 }
  0x55   :  { %v192_v26 = vsel %vm372_vm13, 0, %v190_v36  ;;  %v57_v41 = vmul.f32 %v274_v13, %v56_v34 }
  0x56   :  { %vm168_vm10 = vcmp.lt.s32.totalorder %v167_v1, 0  ;;  %v169_v35 = vsub.s32 0, %v167_v1  ;;  %v209_v44 = vand.u32 3, %v192_v26 }
  0x57   :  { %v58_v47 = vmul.f32 %v57_v41, %v51_v4 }
  0x58   :  { %v170_v3 = vsel %vm168_vm10, %v169_v35, %v167_v1  ;;  %vm214_vm15 = vcmp.eq.s32.totalorder %v209_v44, 2  ;;  %vm211_vm1 = vcmp.eq.s32.totalorder %v209_v44, 0  ;;  %vm210_vm2 = vcmp.lt.s32.totalorder %v209_v44, 2 }
  0x59   :  { %v171_v5 = vclz %v170_v3  ;;  %v60_v53 = vsel %vm59_vm14, %v51_v4, %v58_v47 }
  0x5a   :  { %v63_v58 = vsel %vm61_vm0, %v62_v50, %v60_v53 }
  0x5b   :  { %v260_v6 = vadd.s32 4294967294, %v171_v5 }
  0x5d   :  { %vm261_vm11 = vcmp.lt.s32.totalorder %v260_v6, 0 }
  0x5e   :  { %v174_v54 = vsel %vm261_vm11, 0, %v260_v6 }
  0x5f   :  { %v175_v8 = vsub.s32 32, %v174_v54  ;;  %v176_v9 = vshll.u32 %v167_v1, %v174_v54  ;;  %v179_v10 = vsub.s32 4294967266, %v174_v54 }
  0x61   :  { %v177_v11 = vshrl.u32 %v159_v7, %v175_v8  ;;  %v180_v12 = vadd.s32 127, %v179_v10  ;;  %v310_v7 = vmov -1.0  }
  0x62   :  { %v220_v54 = vsel %vm219_vm5, 1.0, %v310_v7 }
  0x63   :  { %v178_v14 = vor.u32 %v177_v11, %v176_v9  ;;  %v181_v15 = vshll.u32 %v180_v12, 23 }
  0x65   :  { %v182_v16 = vor.u32 4788187, %v181_v15  ;;  %v185_v17 = vcvt.s32.f32 %v178_v14 }
  0x67   :  { %v183_v19 = vand.u32 2147483647, %v182_v16 }
  0x69   :  { %v186_v22 = vmul.f32 %v185_v17, %v183_v19 }
  0x6b   :  { %v187_v25 = vxor.u32 2147483648, %v186_v22 }
  0x6d   :  { %v188_v27 = vsel %vm67_vm12, %v187_v25, %v186_v22 }
  0x6e   :  { %v191_v30 = vsel %vm372_vm13, %v328_v21, %v188_v27 }
  0x6f   :  { %v193_v31 = vmul.f32 %v191_v30, %v191_v30 }
  0x71   :  { %v194_v32 = vmul.f32 -0.001358992, %v193_v31  ;;  %v201_v33 = vmul.f32 -0.00019511016, %v193_v31 }
  0x73   :  { %v195_v37 = vadd.f32 0.041655596, %v194_v32  ;;  %v202_v38 = vadd.f32 0.008332121, %v201_v33 }
  0x75   :  { %v196_v39 = vmul.f32 %v195_v37, %v193_v31  ;;  %v203_v40 = vmul.f32 %v202_v38, %v193_v31 }
  0x77   :  { %v197_v42 = vadd.f32 -0.4999988, %v196_v39  ;;  %v204_v43 = vadd.f32 -0.16666654, %v203_v40 }
  0x79   :  { %v198_v45 = vmul.f32 %v197_v42, %v193_v31  ;;  %v205_v46 = vmul.f32 %v204_v43, %v193_v31 }
  0x7b   :  { %v199_v48 = vadd.f32 1.0, %v198_v45  ;;  %v206_v49 = vadd.f32 1.0, %v205_v46 }
  0x7d   :  { %v207_v51 = vmul.f32 %v206_v49, %v191_v30  ;;  %v215_v52 = vxor.u32 2147483648, %v199_v48 }
  0x7f   :  { %v212_v55 = vxor.u32 2147483648, %v207_v51  ;;  %v216_v57 = vsel %vm214_vm15, %v215_v52, %v207_v51 }
  0x81   :  { %v213_v59 = vsel %vm211_vm1, %v199_v48, %v212_v55 }
  0x82   :  { %v217_v56 = vsel %vm210_vm2, %v213_v59, %v216_v57 }
  0x83   :  { %v218_v60 = vsel %vm208_vm3, nan, %v217_v56 }
  0x84   :  { %v221_v61 = vmul.f32 %v218_v60, %v218_v60  ;;  %v237_v62 = vmul.f32 %v218_v60, %v63_v58 }
  0x86   :  { %v222_v63 = vsub.f32 1.0, %v221_v61  ;;  %240 = vst.msk [vmem:[#allocation3] sm:$0x1] %vm239_vm4, %v237_v62 }
  0x88   :  { %v223_v0 = vmax.f32 %v222_v63, 0.0 }
  0x8a   :  { %275 = vrsqrt.f32 %v223_v0  ;;  %vm231_vm6 = vcmp.eq.f32.partialorder %v223_v0, inf  ;;  %v234_v5 = vand.u32 2147483648, %v223_v0  ;;  %vm233_vm7 = vcmp.eq.f32.partialorder %v223_v0, 0.0 }
  0x90   :  { %v276_v1 = vpop.eup %275 }
  0x91   :  { %v225_v2 = vmul.f32 %v276_v1, %v223_v0 }
  0x93   :  { %v226_v35 = vmul.f32 %v276_v1, %v225_v2 }
  0x95   :  { %v227_v3 = vmul.f32 0.5, %v226_v35 }
  0x97   :  { %v228_v4 = vsub.f32 1.5, %v227_v3 }
  0x99   :  { %v229_v21 = vmul.f32 %v276_v1, %v228_v4 }
  0x9b   :  { %v230_v6 = vmul.f32 %v229_v21, %v223_v0 }
  0x9d   :  { %v232_v8 = vsel %vm231_vm6, %v223_v0, %v230_v6 }
  0x9e   :  { %v235_v9 = vsel %vm233_vm7, %v234_v5, %v232_v8 }
  0x9f   :  { %v236_v10 = vmul.f32 %v235_v9, %v220_v54 }
  0xa1   :  { %v238_v11 = vmul.f32 %v236_v10, %v63_v58 }
  0xa3   :  { %241 = vst.msk [vmem:[#allocation3 + $0x1] sm:$0x1] %vm239_vm4, %v238_v11 }
  0xa4   :  { %252 = dma.vmem_to_hbm [thread:$0]  %s248_s9, 32, %s250_s12, [#allocation4]  }
  0xa5   :  { %301 = dma.done.wait [#allocation4], 32  }
  0xa6   :  { %302 = vsyncadd [#allocation4], 4294967264 }
  0xa7   :  { %257 = vsyncpa [#allocation4], 1 }

</bundles_post_ra>
